<compile_context>
chip_gen: v7x
topology: tpu7x:2x2x1
jax: 0.10.0
libtpu: 0.0.40
codegen_flags: <defaults>
</compile_context>

<pallas_src>
import math

import numpy as np
import jax
import jax.numpy as jnp
from jax.experimental import pallas as pl
from jax.experimental.pallas import tpu as pltpu


def _create_gaussian(window_size: int, sigma: float) -> np.ndarray:
    # Mirrors SSIM.create_gaussian (float32, normalized).
    g = np.array(
        [math.exp(-((x - window_size // 2) ** 2) / float(2 * sigma**2))
         for x in range(window_size)],
        dtype=np.float32,
    )
    return g / g.sum()


def _banded_conv_matrices(H: int, W: int, window_size: int):
    """Banded matrices so that valid conv2d(x, g1 g1^T) == Gv @ x @ Gh."""
    g = _create_gaussian(window_size, 1.5)          # (ws,), f32
    Ho = H - window_size + 1
    Wo = W - window_size + 1
    gv = np.zeros((Ho, H), np.float32)
    for i in range(Ho):
        gv[i, i:i + window_size] = g                # Gv[i, i+a] = g[a]
    gh = np.zeros((W, Wo), np.float32)
    for j in range(Wo):
        gh[j:j + window_size, j] = g                # Gh[j+b, j] = g[b]
    return gv, gh


def _make_ssim_kernel(C: int, val_range: float):
    C1 = (0.01 * val_range) ** 2
    C2 = (0.03 * val_range) ** 2

    def kernel(gv_ref, gh_ref, out_ref, tgt_ref, o_ref):
        gv = gv_ref[...]            # (Ho, H)  f32 banded Gaussian (row pass)
        gh = gh_ref[...]            # (W, Wo)  f32 banded Gaussian (col pass)

        def gconv(p):               # separable "valid" Gaussian conv on the MXU
            t = jnp.dot(gv, p, preferred_element_type=jnp.float32)     # (Ho, W)
            return jnp.dot(t, gh, preferred_element_type=jnp.float32)  # (Ho, Wo)

        total = jnp.zeros((), jnp.float32)
        for c in range(C):          # small static channel loop (C == 3)
            # Cast to f32 *after* the (native-dtype) DMA.
            x = out_ref[0, c].astype(jnp.float32)   # (H, W)
            y = tgt_ref[0, c].astype(jnp.float32)   # (H, W)

            mu1 = gconv(x)
            mu2 = gconv(y)
            m11 = gconv(x * x)
            m22 = gconv(y * y)
            m12 = gconv(x * y)

            mu1_sq = mu1 * mu1
            mu2_sq = mu2 * mu2
            mu12 = mu1 * mu2
            sigma1_sq = m11 - mu1_sq
            sigma2_sq = m22 - mu2_sq
            sigma12 = m12 - mu12

            num = (2.0 * mu12 + C1) * (2.0 * sigma12 + C2)
            den = (mu1_sq + mu2_sq + C1) * (sigma1_sq + sigma2_sq + C2)
            # Exact division (keeps numerics aligned with the PyTorch ref).
            total = total + jnp.sum(num / den)

        o_ref[...] = total.reshape(1, 1, 1)

    return kernel


def ssim(output: jax.Array, target: jax.Array, *, window_size: int = 11,
         val_range: float = 1.0, n_im_channel: int = 3) -> jax.Array:
    # check_shape_dtype equivalent (glue).
    if output.dtype != target.dtype:
        raise TypeError(f"Got output: {output.dtype} and target: {target.dtype}.")
    if output.shape != target.shape:
        raise ValueError(f"Got output: {output.shape} and target: {target.shape}.")

    N, C, H, W = output.shape
    assert C == n_im_channel, "channel count must match n_im_channel"
    Ho = H - window_size + 1
    Wo = W - window_size + 1
    assert Ho > 0 and Wo > 0, "spatial dims must be >= window_size"

    gv_np, gh_np = _banded_conv_matrices(H, W, window_size)
    kernel = _make_ssim_kernel(C, val_range)

    partial_sums = pl.pallas_call(
        kernel,
        out_shape=jax.ShapeDtypeStruct((N, 1, 1), jnp.float32),
        grid_spec=pltpu.PrefetchScalarGridSpec(
            num_scalar_prefetch=0,
            grid=(N,),
            in_specs=[
                pl.BlockSpec((Ho, H), lambda n: (0, 0)),        # Gv (constant)
                pl.BlockSpec((W, Wo), lambda n: (0, 0)),        # Gh (constant)
                pl.BlockSpec((1, C, H, W), lambda n: (n, 0, 0, 0)),
                pl.BlockSpec((1, C, H, W), lambda n: (n, 0, 0, 0)),
            ],
            out_specs=pl.BlockSpec((1, 1, 1), lambda n: (n, 0, 0)),
        ),
        compiler_params=pltpu.CompilerParams(
            dimension_semantics=("parallel",),
            vmem_limit_bytes=64 * 1024 * 1024,
        ),
    )(jnp.asarray(gv_np), jnp.asarray(gh_np), output, target)

    # Final mean over all N*C*Ho*Wo elements of the SSIM map (glue).
    return jnp.sum(partial_sums) / float(N * C * Ho * Wo)


def _ssim_reference(output_np: np.ndarray, target_np: np.ndarray, *,
                    window_size: int = 11, val_range: float = 1.0) -> np.ndarray:
    # Plain NumPy reference mirroring the PyTorch module (direct 2D window).
    g1 = _create_gaussian(window_size, 1.5).reshape(window_size, 1)
    w2d = (g1 @ g1.T).astype(np.float32)
    x = output_np.astype(np.float32)
    y = target_np.astype(np.float32)
    N, C, H, W = x.shape
    Ho = H - window_size + 1
    Wo = W - window_size + 1

    def conv(p):
        acc = np.zeros((N, C, Ho, Wo), np.float32)
        for a in range(window_size):
            for b in range(window_size):
                acc += w2d[a, b] * p[:, :, a:a + Ho, b:b + Wo]
        return acc

    mu1, mu2 = conv(x), conv(y)
    s1 = conv(x * x) - mu1 ** 2
    s2 = conv(y * y) - mu2 ** 2
    s12 = conv(x * y) - mu1 * mu2
    C1 = (0.01 * val_range) ** 2
    C2 = (0.03 * val_range) ** 2
    ssim_map = ((2 * mu1 * mu2 + C1) * (2 * s12 + C2)
                / ((mu1 ** 2 + mu2 ** 2 + C1) * (s1 + s2 + C2)))
    return ssim_map.mean()


if __name__ == "__main__":
    key = jax.random.PRNGKey(0)
    k1, k2 = jax.random.split(key)
    # Small image-like inputs: batch=2, channels=3 (n_im_channel default), 16x16.
    out_img = jax.random.uniform(k1, (2, 3, 16, 16), dtype=jnp.float32)
    tgt_img = jax.random.uniform(k2, (2, 3, 16, 16), dtype=jnp.float32)

    result = ssim(out_img, tgt_img)
    jax.block_until_ready(result)
    assert result.shape == () and result.dtype == jnp.float32

    ref = _ssim_reference(np.asarray(out_img), np.asarray(tgt_img))
    assert np.allclose(np.asarray(result), ref, rtol=1e-4, atol=1e-5), (result, ref)

    print("KERNEL_OK")
</pallas_src>

<mosaic_0001>
module attributes {stable_mosaic.version = 11 : i64} {
  func.func @kernel(%arg0: i32, %arg1: memref<6x16xf32, #tpu.memory_space<vmem>>, %arg2: memref<16x6xf32, #tpu.memory_space<vmem>>, %arg3: memref<1x3x16x16xf32, #tpu.memory_space<vmem>>, %arg4: memref<1x3x16x16xf32, #tpu.memory_space<vmem>>, %arg5: memref<1x1x1xf32, #tpu.memory_space<vmem>>) attributes {dimension_semantics = [#tpu.dimension_semantics<parallel>], iteration_bounds = array<i64: 2>, scalar_prefetch = 0 : i64, scratch_operands = 0 : i64, tpu.core_type = #tpu.core_type<tc>, window_params = [{pipeline_mode = #tpu.pipeline_mode<synchronous>, transform_indices = @transform_0, window_bounds = array<i64: 6, 16>}, {pipeline_mode = #tpu.pipeline_mode<synchronous>, transform_indices = @transform_1, window_bounds = array<i64: 16, 6>}, {transform_indices = @transform_2, window_bounds = array<i64: 1, 3, 16, 16>}, {transform_indices = @transform_3, window_bounds = array<i64: 1, 3, 16, 16>}, {transform_indices = @transform_4, window_bounds = array<i64: 1, 1, 1>}]} {
    %c0 = arith.constant 0 : index
    %c0_0 = arith.constant 0 : index
    %0 = vector.load %arg1[%c0, %c0_0] : memref<6x16xf32, #tpu.memory_space<vmem>>, vector<6x16xf32>
    %c0_1 = arith.constant 0 : index
    %c0_2 = arith.constant 0 : index
    %1 = vector.load %arg2[%c0_1, %c0_2] : memref<16x6xf32, #tpu.memory_space<vmem>>, vector<16x6xf32>
    %c0_3 = arith.constant 0 : index
    %c0_4 = arith.constant 0 : index
    %c0_5 = arith.constant 0 : index
    %c0_6 = arith.constant 0 : index
    %2 = vector.load %arg3[%c0_3, %c0_4, %c0_5, %c0_6] : memref<1x3x16x16xf32, #tpu.memory_space<vmem>>, vector<1x1x16x16xf32>
    %3 = vector.shape_cast %2 : vector<1x1x16x16xf32> to vector<16x16xf32>
    %c0_7 = arith.constant 0 : index
    %c0_8 = arith.constant 0 : index
    %c0_9 = arith.constant 0 : index
    %c0_10 = arith.constant 0 : index
    %4 = vector.load %arg4[%c0_7, %c0_8, %c0_9, %c0_10] : memref<1x3x16x16xf32, #tpu.memory_space<vmem>>, vector<1x1x16x16xf32>
    %5 = vector.shape_cast %4 : vector<1x1x16x16xf32> to vector<16x16xf32>
    %cst = arith.constant dense<0.000000e+00> : vector<6x16xf32>
    %6 = tpu.matmul %0, %3, %cst {dimension_numbers = #tpu.dot_dimension_numbers<[1], [0], [0], [1], [0, 0, 1, 1], [], []>} : vector<6x16xf32>, vector<16x16xf32>, vector<6x16xf32> -> vector<6x16xf32>
    %cst_11 = arith.constant dense<0.000000e+00> : vector<6x6xf32>
    %7 = tpu.matmul %6, %1, %cst_11 {dimension_numbers = #tpu.dot_dimension_numbers<[1], [0], [0], [1], [0, 0, 1, 1], [], []>} : vector<6x16xf32>, vector<16x6xf32>, vector<6x6xf32> -> vector<6x6xf32>
    %cst_12 = arith.constant dense<0.000000e+00> : vector<6x16xf32>
    %8 = tpu.matmul %0, %5, %cst_12 {dimension_numbers = #tpu.dot_dimension_numbers<[1], [0], [0], [1], [0, 0, 1, 1], [], []>} : vector<6x16xf32>, vector<16x16xf32>, vector<6x16xf32> -> vector<6x16xf32>
    %cst_13 = arith.constant dense<0.000000e+00> : vector<6x6xf32>
    %9 = tpu.matmul %8, %1, %cst_13 {dimension_numbers = #tpu.dot_dimension_numbers<[1], [0], [0], [1], [0, 0, 1, 1], [], []>} : vector<6x16xf32>, vector<16x6xf32>, vector<6x6xf32> -> vector<6x6xf32>
    %10 = arith.mulf %3, %3 : vector<16x16xf32>
    %cst_14 = arith.constant dense<0.000000e+00> : vector<6x16xf32>
    %11 = tpu.matmul %0, %10, %cst_14 {dimension_numbers = #tpu.dot_dimension_numbers<[1], [0], [0], [1], [0, 0, 1, 1], [], []>} : vector<6x16xf32>, vector<16x16xf32>, vector<6x16xf32> -> vector<6x16xf32>
    %cst_15 = arith.constant dense<0.000000e+00> : vector<6x6xf32>
    %12 = tpu.matmul %11, %1, %cst_15 {dimension_numbers = #tpu.dot_dimension_numbers<[1], [0], [0], [1], [0, 0, 1, 1], [], []>} : vector<6x16xf32>, vector<16x6xf32>, vector<6x6xf32> -> vector<6x6xf32>
    %13 = arith.mulf %5, %5 : vector<16x16xf32>
    %cst_16 = arith.constant dense<0.000000e+00> : vector<6x16xf32>
    %14 = tpu.matmul %0, %13, %cst_16 {dimension_numbers = #tpu.dot_dimension_numbers<[1], [0], [0], [1], [0, 0, 1, 1], [], []>} : vector<6x16xf32>, vector<16x16xf32>, vector<6x16xf32> -> vector<6x16xf32>
    %cst_17 = arith.constant dense<0.000000e+00> : vector<6x6xf32>
    %15 = tpu.matmul %14, %1, %cst_17 {dimension_numbers = #tpu.dot_dimension_numbers<[1], [0], [0], [1], [0, 0, 1, 1], [], []>} : vector<6x16xf32>, vector<16x6xf32>, vector<6x6xf32> -> vector<6x6xf32>
    %16 = arith.mulf %3, %5 : vector<16x16xf32>
    %cst_18 = arith.constant dense<0.000000e+00> : vector<6x16xf32>
    %17 = tpu.matmul %0, %16, %cst_18 {dimension_numbers = #tpu.dot_dimension_numbers<[1], [0], [0], [1], [0, 0, 1, 1], [], []>} : vector<6x16xf32>, vector<16x16xf32>, vector<6x16xf32> -> vector<6x16xf32>
    %cst_19 = arith.constant dense<0.000000e+00> : vector<6x6xf32>
    %18 = tpu.matmul %17, %1, %cst_19 {dimension_numbers = #tpu.dot_dimension_numbers<[1], [0], [0], [1], [0, 0, 1, 1], [], []>} : vector<6x16xf32>, vector<16x6xf32>, vector<6x6xf32> -> vector<6x6xf32>
    %19 = arith.mulf %7, %7 : vector<6x6xf32>
    %20 = arith.mulf %9, %9 : vector<6x6xf32>
    %21 = arith.mulf %7, %9 : vector<6x6xf32>
    %22 = arith.subf %12, %19 : vector<6x6xf32>
    %23 = arith.subf %15, %20 : vector<6x6xf32>
    %24 = arith.subf %18, %21 : vector<6x6xf32>
    %cst_20 = arith.constant 2.000000e+00 : f32
    %25 = vector.broadcast %cst_20 : f32 to vector<6x6xf32>
    %26 = arith.mulf %25, %21 : vector<6x6xf32>
    %cst_21 = arith.constant 9.99999974E-5 : f32
    %27 = vector.broadcast %cst_21 : f32 to vector<6x6xf32>
    %28 = arith.addf %26, %27 : vector<6x6xf32>
    %cst_22 = arith.constant 2.000000e+00 : f32
    %29 = vector.broadcast %cst_22 : f32 to vector<6x6xf32>
    %30 = arith.mulf %29, %24 : vector<6x6xf32>
    %cst_23 = arith.constant 8.99999984E-4 : f32
    %31 = vector.broadcast %cst_23 : f32 to vector<6x6xf32>
    %32 = arith.addf %30, %31 : vector<6x6xf32>
    %33 = arith.mulf %28, %32 : vector<6x6xf32>
    %34 = arith.addf %19, %20 : vector<6x6xf32>
    %cst_24 = arith.constant 9.99999974E-5 : f32
    %35 = vector.broadcast %cst_24 : f32 to vector<6x6xf32>
    %36 = arith.addf %34, %35 : vector<6x6xf32>
    %37 = arith.addf %22, %23 : vector<6x6xf32>
    %cst_25 = arith.constant 8.99999984E-4 : f32
    %38 = vector.broadcast %cst_25 : f32 to vector<6x6xf32>
    %39 = arith.addf %37, %38 : vector<6x6xf32>
    %40 = arith.mulf %36, %39 : vector<6x6xf32>
    %41 = arith.divf %33, %40 : vector<6x6xf32>
    %42 = vector.shape_cast %41 : vector<6x6xf32> to vector<1x6x6xf32>
    %cst_26 = arith.constant dense<0.000000e+00> : vector<1xf32>
    %43 = vector.multi_reduction <add>, %42, %cst_26 [1, 2] : vector<1x6x6xf32> to vector<1xf32>
    %44 = vector.shape_cast %43 : vector<1xf32> to vector<1x1x1xf32>
    %45 = vector.extract %44[0, 0, 0] : f32 from vector<1x1x1xf32>
    %cst_27 = arith.constant 0.000000e+00 : f32
    %46 = arith.addf %cst_27, %45 : f32
    %c0_28 = arith.constant 0 : index
    %c1 = arith.constant 1 : index
    %c0_29 = arith.constant 0 : index
    %c0_30 = arith.constant 0 : index
    %47 = vector.load %arg3[%c0_28, %c1, %c0_29, %c0_30] : memref<1x3x16x16xf32, #tpu.memory_space<vmem>>, vector<1x1x16x16xf32>
    %48 = vector.shape_cast %47 : vector<1x1x16x16xf32> to vector<16x16xf32>
    %c0_31 = arith.constant 0 : index
    %c1_32 = arith.constant 1 : index
    %c0_33 = arith.constant 0 : index
    %c0_34 = arith.constant 0 : index
    %49 = vector.load %arg4[%c0_31, %c1_32, %c0_33, %c0_34] : memref<1x3x16x16xf32, #tpu.memory_space<vmem>>, vector<1x1x16x16xf32>
    %50 = vector.shape_cast %49 : vector<1x1x16x16xf32> to vector<16x16xf32>
    %cst_35 = arith.constant dense<0.000000e+00> : vector<6x16xf32>
    %51 = tpu.matmul %0, %48, %cst_35 {dimension_numbers = #tpu.dot_dimension_numbers<[1], [0], [0], [1], [0, 0, 1, 1], [], []>} : vector<6x16xf32>, vector<16x16xf32>, vector<6x16xf32> -> vector<6x16xf32>
    %cst_36 = arith.constant dense<0.000000e+00> : vector<6x6xf32>
    %52 = tpu.matmul %51, %1, %cst_36 {dimension_numbers = #tpu.dot_dimension_numbers<[1], [0], [0], [1], [0, 0, 1, 1], [], []>} : vector<6x16xf32>, vector<16x6xf32>, vector<6x6xf32> -> vector<6x6xf32>
    %cst_37 = arith.constant dense<0.000000e+00> : vector<6x16xf32>
    %53 = tpu.matmul %0, %50, %cst_37 {dimension_numbers = #tpu.dot_dimension_numbers<[1], [0], [0], [1], [0, 0, 1, 1], [], []>} : vector<6x16xf32>, vector<16x16xf32>, vector<6x16xf32> -> vector<6x16xf32>
    %cst_38 = arith.constant dense<0.000000e+00> : vector<6x6xf32>
    %54 = tpu.matmul %53, %1, %cst_38 {dimension_numbers = #tpu.dot_dimension_numbers<[1], [0], [0], [1], [0, 0, 1, 1], [], []>} : vector<6x16xf32>, vector<16x6xf32>, vector<6x6xf32> -> vector<6x6xf32>
    %55 = arith.mulf %48, %48 : vector<16x16xf32>
    %cst_39 = arith.constant dense<0.000000e+00> : vector<6x16xf32>
    %56 = tpu.matmul %0, %55, %cst_39 {dimension_numbers = #tpu.dot_dimension_numbers<[1], [0], [0], [1], [0, 0, 1, 1], [], []>} : vector<6x16xf32>, vector<16x16xf32>, vector<6x16xf32> -> vector<6x16xf32>
    %cst_40 = arith.constant dense<0.000000e+00> : vector<6x6xf32>
    %57 = tpu.matmul %56, %1, %cst_40 {dimension_numbers = #tpu.dot_dimension_numbers<[1], [0], [0], [1], [0, 0, 1, 1], [], []>} : vector<6x16xf32>, vector<16x6xf32>, vector<6x6xf32> -> vector<6x6xf32>
    %58 = arith.mulf %50, %50 : vector<16x16xf32>
    %cst_41 = arith.constant dense<0.000000e+00> : vector<6x16xf32>
    %59 = tpu.matmul %0, %58, %cst_41 {dimension_numbers = #tpu.dot_dimension_numbers<[1], [0], [0], [1], [0, 0, 1, 1], [], []>} : vector<6x16xf32>, vector<16x16xf32>, vector<6x16xf32> -> vector<6x16xf32>
    %cst_42 = arith.constant dense<0.000000e+00> : vector<6x6xf32>
    %60 = tpu.matmul %59, %1, %cst_42 {dimension_numbers = #tpu.dot_dimension_numbers<[1], [0], [0], [1], [0, 0, 1, 1], [], []>} : vector<6x16xf32>, vector<16x6xf32>, vector<6x6xf32> -> vector<6x6xf32>
    %61 = arith.mulf %48, %50 : vector<16x16xf32>
    %cst_43 = arith.constant dense<0.000000e+00> : vector<6x16xf32>
    %62 = tpu.matmul %0, %61, %cst_43 {dimension_numbers = #tpu.dot_dimension_numbers<[1], [0], [0], [1], [0, 0, 1, 1], [], []>} : vector<6x16xf32>, vector<16x16xf32>, vector<6x16xf32> -> vector<6x16xf32>
    %cst_44 = arith.constant dense<0.000000e+00> : vector<6x6xf32>
    %63 = tpu.matmul %62, %1, %cst_44 {dimension_numbers = #tpu.dot_dimension_numbers<[1], [0], [0], [1], [0, 0, 1, 1], [], []>} : vector<6x16xf32>, vector<16x6xf32>, vector<6x6xf32> -> vector<6x6xf32>
    %64 = arith.mulf %52, %52 : vector<6x6xf32>
    %65 = arith.mulf %54, %54 : vector<6x6xf32>
    %66 = arith.mulf %52, %54 : vector<6x6xf32>
    %67 = arith.subf %57, %64 : vector<6x6xf32>
    %68 = arith.subf %60, %65 : vector<6x6xf32>
    %69 = arith.subf %63, %66 : vector<6x6xf32>
    %cst_45 = arith.constant 2.000000e+00 : f32
    %70 = vector.broadcast %cst_45 : f32 to vector<6x6xf32>
    %71 = arith.mulf %70, %66 : vector<6x6xf32>
    %cst_46 = arith.constant 9.99999974E-5 : f32
    %72 = vector.broadcast %cst_46 : f32 to vector<6x6xf32>
    %73 = arith.addf %71, %72 : vector<6x6xf32>
    %cst_47 = arith.constant 2.000000e+00 : f32
    %74 = vector.broadcast %cst_47 : f32 to vector<6x6xf32>
    %75 = arith.mulf %74, %69 : vector<6x6xf32>
    %cst_48 = arith.constant 8.99999984E-4 : f32
    %76 = vector.broadcast %cst_48 : f32 to vector<6x6xf32>
    %77 = arith.addf %75, %76 : vector<6x6xf32>
    %78 = arith.mulf %73, %77 : vector<6x6xf32>
    %79 = arith.addf %64, %65 : vector<6x6xf32>
    %cst_49 = arith.constant 9.99999974E-5 : f32
    %80 = vector.broadcast %cst_49 : f32 to vector<6x6xf32>
    %81 = arith.addf %79, %80 : vector<6x6xf32>
    %82 = arith.addf %67, %68 : vector<6x6xf32>
    %cst_50 = arith.constant 8.99999984E-4 : f32
    %83 = vector.broadcast %cst_50 : f32 to vector<6x6xf32>
    %84 = arith.addf %82, %83 : vector<6x6xf32>
    %85 = arith.mulf %81, %84 : vector<6x6xf32>
    %86 = arith.divf %78, %85 : vector<6x6xf32>
    %87 = vector.shape_cast %86 : vector<6x6xf32> to vector<1x6x6xf32>
    %cst_51 = arith.constant dense<0.000000e+00> : vector<1xf32>
    %88 = vector.multi_reduction <add>, %87, %cst_51 [1, 2] : vector<1x6x6xf32> to vector<1xf32>
    %89 = vector.shape_cast %88 : vector<1xf32> to vector<1x1x1xf32>
    %90 = vector.extract %89[0, 0, 0] : f32 from vector<1x1x1xf32>
    %91 = arith.addf %46, %90 : f32
    %c0_52 = arith.constant 0 : index
    %c2 = arith.constant 2 : index
    %c0_53 = arith.constant 0 : index
    %c0_54 = arith.constant 0 : index
    %92 = vector.load %arg3[%c0_52, %c2, %c0_53, %c0_54] : memref<1x3x16x16xf32, #tpu.memory_space<vmem>>, vector<1x1x16x16xf32>
    %93 = vector.shape_cast %92 : vector<1x1x16x16xf32> to vector<16x16xf32>
    %c0_55 = arith.constant 0 : index
    %c2_56 = arith.constant 2 : index
    %c0_57 = arith.constant 0 : index
    %c0_58 = arith.constant 0 : index
    %94 = vector.load %arg4[%c0_55, %c2_56, %c0_57, %c0_58] : memref<1x3x16x16xf32, #tpu.memory_space<vmem>>, vector<1x1x16x16xf32>
    %95 = vector.shape_cast %94 : vector<1x1x16x16xf32> to vector<16x16xf32>
    %cst_59 = arith.constant dense<0.000000e+00> : vector<6x16xf32>
    %96 = tpu.matmul %0, %93, %cst_59 {dimension_numbers = #tpu.dot_dimension_numbers<[1], [0], [0], [1], [0, 0, 1, 1], [], []>} : vector<6x16xf32>, vector<16x16xf32>, vector<6x16xf32> -> vector<6x16xf32>
    %cst_60 = arith.constant dense<0.000000e+00> : vector<6x6xf32>
    %97 = tpu.matmul %96, %1, %cst_60 {dimension_numbers = #tpu.dot_dimension_numbers<[1], [0], [0], [1], [0, 0, 1, 1], [], []>} : vector<6x16xf32>, vector<16x6xf32>, vector<6x6xf32> -> vector<6x6xf32>
    %cst_61 = arith.constant dense<0.000000e+00> : vector<6x16xf32>
    %98 = tpu.matmul %0, %95, %cst_61 {dimension_numbers = #tpu.dot_dimension_numbers<[1], [0], [0], [1], [0, 0, 1, 1], [], []>} : vector<6x16xf32>, vector<16x16xf32>, vector<6x16xf32> -> vector<6x16xf32>
    %cst_62 = arith.constant dense<0.000000e+00> : vector<6x6xf32>
    %99 = tpu.matmul %98, %1, %cst_62 {dimension_numbers = #tpu.dot_dimension_numbers<[1], [0], [0], [1], [0, 0, 1, 1], [], []>} : vector<6x16xf32>, vector<16x6xf32>, vector<6x6xf32> -> vector<6x6xf32>
    %100 = arith.mulf %93, %93 : vector<16x16xf32>
    %cst_63 = arith.constant dense<0.000000e+00> : vector<6x16xf32>
    %101 = tpu.matmul %0, %100, %cst_63 {dimension_numbers = #tpu.dot_dimension_numbers<[1], [0], [0], [1], [0, 0, 1, 1], [], []>} : vector<6x16xf32>, vector<16x16xf32>, vector<6x16xf32> -> vector<6x16xf32>
    %cst_64 = arith.constant dense<0.000000e+00> : vector<6x6xf32>
    %102 = tpu.matmul %101, %1, %cst_64 {dimension_numbers = #tpu.dot_dimension_numbers<[1], [0], [0], [1], [0, 0, 1, 1], [], []>} : vector<6x16xf32>, vector<16x6xf32>, vector<6x6xf32> -> vector<6x6xf32>
    %103 = arith.mulf %95, %95 : vector<16x16xf32>
    %cst_65 = arith.constant dense<0.000000e+00> : vector<6x16xf32>
    %104 = tpu.matmul %0, %103, %cst_65 {dimension_numbers = #tpu.dot_dimension_numbers<[1], [0], [0], [1], [0, 0, 1, 1], [], []>} : vector<6x16xf32>, vector<16x16xf32>, vector<6x16xf32> -> vector<6x16xf32>
    %cst_66 = arith.constant dense<0.000000e+00> : vector<6x6xf32>
    %105 = tpu.matmul %104, %1, %cst_66 {dimension_numbers = #tpu.dot_dimension_numbers<[1], [0], [0], [1], [0, 0, 1, 1], [], []>} : vector<6x16xf32>, vector<16x6xf32>, vector<6x6xf32> -> vector<6x6xf32>
    %106 = arith.mulf %93, %95 : vector<16x16xf32>
    %cst_67 = arith.constant dense<0.000000e+00> : vector<6x16xf32>
    %107 = tpu.matmul %0, %106, %cst_67 {dimension_numbers = #tpu.dot_dimension_numbers<[1], [0], [0], [1], [0, 0, 1, 1], [], []>} : vector<6x16xf32>, vector<16x16xf32>, vector<6x16xf32> -> vector<6x16xf32>
    %cst_68 = arith.constant dense<0.000000e+00> : vector<6x6xf32>
    %108 = tpu.matmul %107, %1, %cst_68 {dimension_numbers = #tpu.dot_dimension_numbers<[1], [0], [0], [1], [0, 0, 1, 1], [], []>} : vector<6x16xf32>, vector<16x6xf32>, vector<6x6xf32> -> vector<6x6xf32>
    %109 = arith.mulf %97, %97 : vector<6x6xf32>
    %110 = arith.mulf %99, %99 : vector<6x6xf32>
    %111 = arith.mulf %97, %99 : vector<6x6xf32>
    %112 = arith.subf %102, %109 : vector<6x6xf32>
    %113 = arith.subf %105, %110 : vector<6x6xf32>
    %114 = arith.subf %108, %111 : vector<6x6xf32>
    %cst_69 = arith.constant 2.000000e+00 : f32
    %115 = vector.broadcast %cst_69 : f32 to vector<6x6xf32>
    %116 = arith.mulf %115, %111 : vector<6x6xf32>
    %cst_70 = arith.constant 9.99999974E-5 : f32
    %117 = vector.broadcast %cst_70 : f32 to vector<6x6xf32>
    %118 = arith.addf %116, %117 : vector<6x6xf32>
    %cst_71 = arith.constant 2.000000e+00 : f32
    %119 = vector.broadcast %cst_71 : f32 to vector<6x6xf32>
    %120 = arith.mulf %119, %114 : vector<6x6xf32>
    %cst_72 = arith.constant 8.99999984E-4 : f32
    %121 = vector.broadcast %cst_72 : f32 to vector<6x6xf32>
    %122 = arith.addf %120, %121 : vector<6x6xf32>
    %123 = arith.mulf %118, %122 : vector<6x6xf32>
    %124 = arith.addf %109, %110 : vector<6x6xf32>
    %cst_73 = arith.constant 9.99999974E-5 : f32
    %125 = vector.broadcast %cst_73 : f32 to vector<6x6xf32>
    %126 = arith.addf %124, %125 : vector<6x6xf32>
    %127 = arith.addf %112, %113 : vector<6x6xf32>
    %cst_74 = arith.constant 8.99999984E-4 : f32
    %128 = vector.broadcast %cst_74 : f32 to vector<6x6xf32>
    %129 = arith.addf %127, %128 : vector<6x6xf32>
    %130 = arith.mulf %126, %129 : vector<6x6xf32>
    %131 = arith.divf %123, %130 : vector<6x6xf32>
    %132 = vector.shape_cast %131 : vector<6x6xf32> to vector<1x6x6xf32>
    %cst_75 = arith.constant dense<0.000000e+00> : vector<1xf32>
    %133 = vector.multi_reduction <add>, %132, %cst_75 [1, 2] : vector<1x6x6xf32> to vector<1xf32>
    %134 = vector.shape_cast %133 : vector<1xf32> to vector<1x1x1xf32>
    %135 = vector.extract %134[0, 0, 0] : f32 from vector<1x1x1xf32>
    %136 = arith.addf %91, %135 : f32
    %137 = vector.broadcast %136 : f32 to vector<1x1x1xf32>
    %c0_76 = arith.constant 0 : index
    %c0_77 = arith.constant 0 : index
    %c0_78 = arith.constant 0 : index
    %138 = vector.load %arg5[%c0_76, %c0_77, %c0_78] : memref<1x1x1xf32, #tpu.memory_space<vmem>>, vector<1x1x1xf32>
    tpu.vector_store %arg5[%c0_76, %c0_77, %c0_78], %137 {strides = array<i32>} : memref<1x1x1xf32, #tpu.memory_space<vmem>>, vector<1x1x1xf32>,
    return
  }
  func.func @transform_0(%arg0: i32) -> (i32, i32) {
    %c0_i32 = arith.constant 0 : i32
    %c0_i32_0 = arith.constant 0 : i32
    %c0_i32_1 = arith.constant 0 : i32
    return %c0_i32, %c0_i32_0 : i32, i32
  }
  func.func @transform_1(%arg0: i32) -> (i32, i32) {
    %c0_i32 = arith.constant 0 : i32
    %c0_i32_0 = arith.constant 0 : i32
    %c0_i32_1 = arith.constant 0 : i32
    return %c0_i32, %c0_i32_0 : i32, i32
  }
  func.func @transform_2(%arg0: i32) -> (i32, i32, i32, i32) {
    %c0_i32 = arith.constant 0 : i32
    %c0_i32_0 = arith.constant 0 : i32
    %c0_i32_1 = arith.constant 0 : i32
    %c0_i32_2 = arith.constant 0 : i32
    return %arg0, %c0_i32, %c0_i32_0, %c0_i32_1 : i32, i32, i32, i32
  }
  func.func @transform_3(%arg0: i32) -> (i32, i32, i32, i32) {
    %c0_i32 = arith.constant 0 : i32
    %c0_i32_0 = arith.constant 0 : i32
    %c0_i32_1 = arith.constant 0 : i32
    %c0_i32_2 = arith.constant 0 : i32
    return %arg0, %c0_i32, %c0_i32_0, %c0_i32_1 : i32, i32, i32, i32
  }
  func.func @transform_4(%arg0: i32) -> (i32, i32, i32) {
    %c0_i32 = arith.constant 0 : i32
    %c0_i32_0 = arith.constant 0 : i32
    %c0_i32_1 = arith.constant 0 : i32
    return %arg0, %c0_i32, %c0_i32_0 : i32, i32, i32
  }
}

</mosaic_0001>

<bundles_post_ra>
// kernel: tpu_custom_call.1
= control target key start
LH: loop header
LB: loop body
LE: loop exit
PB: predicated region body
PF: predicated region fallthrough
CT: control target
= control target key end

     0   :  { %s3888_s0 = inlined_call_operand.hbm [shape: f32[6,16], index: 0, kind: input, shape index: {}]   ;;  %s3889_s1 = inlined_call_operand.hbm [shape: f32[16,6], index: 1, kind: input, shape index: {}]   ;;  %s3890_s2 = inlined_call_operand.hbm [shape: f32[2,3,16,16], index: 2, kind: input, shape index: {}]   ;;  %s3891_s3 = inlined_call_operand.hbm [shape: f32[2,3,16,16], index: 3, kind: input, shape index: {}]   ;;  %s3892_s4 = inlined_call_operand.hbm [shape: f32[2,1,1], index: 4, kind: output, shape index: {}]  }
   0x1   :  { %3900 = sst [smem:[#allocation16_spill]] %s3888_s0 }
   0x2   :  { %9 = vsyncpa [#allocation3], 0 }
   0x3   :  { %10 = vsyncpa [#allocation6], 0 }
   0x4   :  { %11 = vsyncpa [#allocation4], 0 }
   0x5   :  { %13 = vsyncpa [#allocation4 + $0x1], 0  ;;  %s3434_s15 = smov 0   ;;  %s3436_s16 = smov 0  }
   0x6   :  { %s3438_s17 = smov 0   ;;  %s3440_s18 = smov 0  }
   0x7 LB: > { %3901 = sst [smem:[#allocation14_spill]] %s3393_s17  ;;  %s3455_s19 = sadd.s32 4294967295, %s3397_s18   ;;  %s3397_s18 = sphi %s3440_s18, %s3928_s18   ;;  %s3393_s17 = sphi %s3438_s17, %s3925_s17   ;;  %s3389_s16 = sphi %s3436_s16, %s3927_s16   ;;  %s3385_s15 = sphi %s3434_s15, %s3926_s15  }
   0x8   : > { %s2672_s20 = sadd.s32 4294967294, %s3397_s18   ;;  %s3459_s21 = sadd.s32 1, %s3397_s18  }
   0x9   : > { %s68_s22 = sadd.s32 1, %s3393_s17  ;;  %s65_s23 = ssub.s32 %s3397_s18, %s3459_s21 }
   0xa   : > { %p75_p0 = scmp.ne.s32.totalorder %s3393_s17, %s3389_s16  ;;  %p66_p1 = scmp.eq.s32.totalorder %s65_s23, 0 }
   0xb   : > { %p76_p2 = scmp.eq.s32.totalorder %s3397_s18, 0  ;;  %p81_p3 = scmp.ne.s32.totalorder %s3389_s16, %s3385_s15 }
   0xc   : > { %p3893_p4 = scmp.eq.s32.totalorder %s3455_s19, 0  ;;  %p131_p7 = scmp.eq.s32.totalorder %s3455_s19, 1 }
   0xd   : > { %s3471_s24 = scalar_select %p66_p1, %s3393_s17, %s68_s22  }
   0xe   : > { %p3473_p5 = por %p76_p2, %p75_p0  ;;  %p3479_p6 = por %p3893_p4, %p81_p3 }
   0xf   : > { %3902 = sst [smem:[#allocation15_spill]] %s3471_s24  ;;  %p137_p8 = scmp.eq.s32.totalorder %s2672_s20, 1 }
  0x10   : > { %s3904_s26 = scalar_select %p3479_p6, 1, 0 }
  0x11   : > { %p2673_p9 = scmp.ge.s32.totalorder %s3397_s18, 1  ;;  %p144_p10 = scmp.lt.s32.totalorder %s3397_s18, 3 }
  0x12   : > { %p3486_p11 = por %p131_p7, %p75_p0  ;;  %p3490_p12 = por %p137_p8, %p81_p3 }
  0x13   : > { %p3494_p13 = pnand %p2673_p9, %p144_p10  ;;  %s3399_s30 = smov [#allocation2]  }
  0x14   : > { %s3905_s27 = scalar_select %p3486_p11, 1, 0 }
  0x15   : > { %s3906_s28 = scalar_select %p3490_p12, 1, 0 }
  0x16   : > { %s3907_s29 = scalar_select %p3494_p13, 1, 0 }
  0x17   : > { %p3138_p2 = pneg %p3494_p13  ;;  %s157_s5 = sshll.u32 %s3399_s30, 4  ;;  %s158_s5 = int_to_ptr.vmem [resolvable:$true] %s157_s5 }
  0x18   : > { %p3158_p4 = scmp.lt.s32.totalorder %s3397_s18, 2  ;;  %p3908_p0 = scmp.eq.s32.totalorder %s3455_s19, 0 }
  0x19   : > { %s181_s8 = sand.u32 1, %s3397_s18   ;;  %s3911_s0 = sld [smem:[#allocation16_spill]] }
  0x1a   : > { %p3504_p7 = pnand %p3138_p2, %p3908_p0  ;;  %p3510_p3 = pnand %p3158_p4, %p3473_p5 }
  0x1c   : > { %s3910_s7 = scalar_select %p3510_p3, 1, 0 }
  0x1d   : > { %p3899_p9 = pneg %p3504_p7 }
  0x1f   : > { %s3207_s11 = scalar_lea.hbm %s3911_s0, 128 }
  0x20   : > { %p3208_p8 = scmp.ne.s32.totalorder %s3911_s0, %s3207_s11  ;;  %p3214_p4 = scmp.lt.u32.totalorder %s3207_s11, %s3911_s0 }
  0x22   : > { %p3210_p10 = pnand %p3899_p9, %p3208_p8 }
  0x24   : > { %p3211_p2 = pneg %p3210_p10 }
  0x26   : > { %p3216_p5 = pnand %p3214_p4, %p3211_p2 }
  0x28   : > { %3219 = shalt.err (!%p3216_p5)
}
  0x29   : > { %s3220_s22 = scalar_lea.vmem %s158_s5, 128  ;;  %p3228_p11 = scmp.lt.s32.totalorder %s158_s5, %s158_s5 }
  0x2a   : > { %p3221_p0 = scmp.ne.s32.totalorder %s158_s5, %s3220_s22  ;;  %p3229_p6 = scmp.lt.s32.totalorder %s3220_s22, %s3220_s22 }
  0x2c   : > { %p3223_p1 = pnand %p3221_p0, %p3899_p9  ;;  %p3230_p13 = por %p3229_p6, %p3228_p11 }
  0x2e   : > { %p3224_p12 = pneg %p3223_p1 }
  0x30   : > { %p3231_p3 = pnand %p3230_p13, %p3224_p12 }
  0x32   : > { %3234 = shalt.err (!%p3231_p3)
}
  0x33   : > { %3141 = dma.hbm_to_vmem [thread:$0]  (!%p3504_p7), %s3911_s0, 128, %s158_s5, [#allocation3]  }
  0x34   : > { %s183_s30 = sand.u32 1, %s3393_s17   ;;  %s3114_s9 = smul.u32 768, %s3397_s18 }
  0x35   : > { %s3539_s10 = smul.u32 48, %s183_s30  ;;  %s3400_s14 = smov [#allocation5]  }
  0x36   : > { %s3544_s13 = scalar_lea.hbm %s3890_s2, %s3114_s9  ;;  %s167_s20 = sshll.u32 %s3400_s14, 4  ;;  %s3546_s20 = int_to_ptr.vmem [resolvable:$true] %s167_s20 }
  0x37   : > { %s185_s5 = scalar_lea.vmem [#allocation7], %s3539_s10  ;;  %s3554_s30 = scalar_lea.hbm %s3891_s3, %s3114_s9 }
  0x38   : > { %s192_s22 = sshll.u32 %s185_s5, 4  ;;  %s3558_s11 = scalar_lea.sflag [#allocation3], %s181_s8  ;;  %s3549_s22 = int_to_ptr.vmem [resolvable:$true] %s192_s22 }
  0x39   : > { %s3235_s12 = scalar_lea.hbm %s3544_s13, 768  ;;  %p3912_p11 = scmp.ne.s32.totalorder %s3910_s7, 0 }
  0x3a   : > { %p3236_p6 = scmp.ne.s32.totalorder %s3544_s13, %s3235_s12  ;;  %s3240_s0 = scalar_lea.hbm %s3890_s2, 1536 }
  0x3b   : > { %p3237_p12 = pneg %p3912_p11  ;;  %p3241_p3 = scmp.lt.u32.totalorder %s3544_s13, %s3890_s2 }
  0x3c   : > { %p3242_p8 = scmp.lt.u32.totalorder %s3240_s0, %s3235_s12  ;;  %p3244_p2 = scmp.lt.u32.totalorder %s3235_s12, %s3544_s13 }
  0x3d   : > { %p3238_p13 = pnand %p3237_p12, %p3236_p6 }
  0x3e   : > { %p3243_p10 = por %p3242_p8, %p3241_p3 }
  0x3f   : > { %p3239_p1 = pneg %p3238_p13 }
  0x40   : > { %p3245_p4 = por %p3244_p2, %p3243_p10 }
  0x42   : > { %p3246_p5 = pnand %p3245_p4, %p3239_p1 }
  0x44   : > { %3249 = shalt.err (!%p3246_p5)
}
  0x45   : > { %s3250_s8 = scalar_lea.vmem %s3549_s22, 768  ;;  %s3401_s9 = smov [#allocation7]  }
  0x46   : > { %p3251_p0 = scmp.ne.s32.totalorder %s3549_s22, %s3250_s8  ;;  %s3255_s23 = sshll.u32 %s3401_s9, 4  ;;  %s3256_s23 = int_to_ptr.vmem [resolvable:$false] %s3255_s23 }
  0x47   : > { %s3257_s17 = scalar_lea.vmem %s3256_s23, 1536  ;;  %p3258_p9 = scmp.lt.s32.totalorder %s3549_s22, %s3256_s23 }
  0x48   : > { %p3253_p6 = pnand %p3251_p0, %p3237_p12  ;;  %p3259_p3 = scmp.lt.s32.totalorder %s3257_s17, %s3250_s8 }
  0x4a   : > { %p3254_p13 = pneg %p3253_p6  ;;  %p3260_p8 = por %p3259_p3, %p3258_p9 }
  0x4c   : > { %p3261_p10 = pnand %p3260_p8, %p3254_p13 }
  0x4e   : > { %3264 = shalt.err (!%p3261_p10)
}
  0x4f   : > { %s3402_s0 = smov 128   ;;  %s3403_s24 = smov 8  }
  0x50   : > { %3148 = dma.hbm_to_vmem [thread:$0]  (!%p3912_p11), %s3544_s13, 768, %s3549_s22, %s3558_s11, %s3402_s0, %s3402_s0, %s3403_s24  }
  0x51   : > { %s3265_s14 = scalar_lea.hbm %s3889_s1, 256  ;;  %p3913_p1 = pneg %p3504_p7 }
  0x52   : > { %p3266_p9 = scmp.ne.s32.totalorder %s3889_s1, %s3265_s14  ;;  %p3272_p5 = scmp.lt.u32.totalorder %s3265_s14, %s3889_s1 }
  0x54   : > { %p3268_p2 = pnand %p3266_p9, %p3913_p1 }
  0x56   : > { %p3269_p4 = pneg %p3268_p2 }
  0x58   : > { %p3274_p0 = pnand %p3272_p5, %p3269_p4 }
  0x5a   : > { %3277 = shalt.err (!%p3274_p0)
}
  0x5b   : > { %s3278_s13 = scalar_lea.vmem %s3546_s20, 256  ;;  %p3914_p13 = pmov %p3913_p1 }
  0x5c   : > { %p3279_p6 = scmp.ne.s32.totalorder %s3546_s20, %s3278_s13  ;;  %p3286_p10 = scmp.lt.s32.totalorder %s3546_s20, %s3546_s20 }
  0x5d   : > { %p3287_p9 = scmp.lt.s32.totalorder %s3278_s13, %s3278_s13 }
  0x5e   : > { %p3281_p3 = pnand %p3279_p6, %p3914_p13 }
  0x5f   : > { %p3288_p1 = por %p3287_p9, %p3286_p10 }
  0x60   : > { %p3282_p8 = pneg %p3281_p3 }
  0x62   : > { %p3289_p2 = pnand %p3288_p1, %p3282_p8 }
  0x64   : > { %3292 = shalt.err (!%p3289_p2)
}
  0x65   : > { %3144 = dma.hbm_to_vmem [thread:$0]  (!%p3504_p7), %s3889_s1, 256, %s3546_s20, [#allocation6], %s3402_s0, %s3402_s0, %s3403_s24  }
  0x66   : > { %s206_s25 = scalar_lea.vmem [#allocation8], %s3539_s10  ;;  %s3293_s14 = scalar_lea.hbm %s3554_s30, 768 }
  0x67   : > { %s213_s12 = sshll.u32 %s206_s25, 4  ;;  %p3294_p4 = scmp.ne.s32.totalorder %s3554_s30, %s3293_s14  ;;  %s3618_s12 = int_to_ptr.vmem [resolvable:$true] %s213_s12 }
  0x68   : > { %s3298_s8 = scalar_lea.hbm %s3891_s3, 1536  ;;  %p3299_p6 = scmp.lt.u32.totalorder %s3554_s30, %s3891_s3 }
  0x69   : > { %p3296_p5 = pnand %p3294_p4, %p3237_p12  ;;  %p3300_p13 = scmp.lt.u32.totalorder %s3298_s8, %s3293_s14 }
  0x6a   : > { %p3302_p3 = scmp.lt.u32.totalorder %s3293_s14, %s3554_s30 }
  0x6b   : > { %p3297_p0 = pneg %p3296_p5  ;;  %p3301_p7 = por %p3300_p13, %p3299_p6 }
  0x6d   : > { %p3303_p8 = por %p3302_p3, %p3301_p7 }
  0x6f   : > { %p3304_p10 = pnand %p3303_p8, %p3297_p0 }
  0x71   : > { %3307 = shalt.err (!%p3304_p10)
}
  0x72   : > { %s3308_s10 = scalar_lea.vmem %s3618_s12, 768  ;;  %s3404_s20 = smov [#allocation8]  }
  0x73   : > { %p3309_p9 = scmp.ne.s32.totalorder %s3618_s12, %s3308_s10  ;;  %s3313_s13 = sshll.u32 %s3404_s20, 4  ;;  %s3314_s13 = int_to_ptr.vmem [resolvable:$false] %s3313_s13 }
  0x74   : > { %s3315_s22 = scalar_lea.vmem %s3314_s13, 1536  ;;  %p3316_p4 = scmp.lt.s32.totalorder %s3618_s12, %s3314_s13 }
  0x75   : > { %p3311_p1 = pnand %p3309_p9, %p3237_p12  ;;  %p3317_p5 = scmp.lt.s32.totalorder %s3315_s22, %s3308_s10 }
  0x77   : > { %p3312_p2 = pneg %p3311_p1  ;;  %p3318_p6 = por %p3317_p5, %p3316_p4 }
  0x79   : > { %p3319_p13 = pnand %p3318_p6, %p3312_p2 }
  0x7b   : > { %3322 = shalt.err (!%p3319_p13)
}
  0x7c   : > { %3151 = dma.hbm_to_vmem [thread:$0]  (!%p3912_p11), %s3554_s30, 768, %s3618_s12, %s3558_s11, %s3402_s0, %s3402_s0, %s3403_s24  }
  0x7d   : > { %p3915_p12 = scmp.ne.s32.totalorder %s3907_s29, 0 }
  0x7e   : > { %p3916_p0 = scmp.eq.s32.totalorder (!%p3915_p12), %s3455_s19, 0 }
  0x7f   : > { %225 = sbr.rel (%p3915_p12) target bundleno = 868 (0x364), region = 36 }
  0x86   : > { %3368 = dma.done.wait (%p3916_p0), [#allocation3], 128   ;;  %p3917_p7 = pmov %p3916_p0 }
  0x87   : > { %p3918_p3 = pmov %p3916_p0 }
  0x88   : > { %3370 = vsyncadd (%p3917_p7), [#allocation3], 4294967168 }
  0x89   : > { %3372 = dma.done.wait (%p3918_p3), [#allocation6], 256   ;;  %p3919_p8 = pmov %p3916_p0 }
  0x8a   : > { %s235_s7 = sand.u32 1, %s3455_s19   ;;  %s3659_s30 = sand.u32 1, %s3389_s16  }
  0x8b   : > { %3374 = vsyncadd (%p3919_p8), [#allocation6], 4294967040  ;;  %s3117_s29 = smul.u32 48, %s3659_s30  ;;  %s236_s11 = scalar_lea.sflag [#allocation3], %s235_s7 }
  0x8c   : > { %p3920_p11 = scmp.ne.s32.totalorder %s3904_s26, 0 }
  0x8d   : > { %s3662_s0 = scalar_lea.vmem [#allocation7], %s3117_s29 }
  0x8e   : > { %3376 = dma.done.wait (%p3920_p11), %s236_s11, 1536  }
  0x8f   : > { %3378 = vsyncadd (%p3920_p11), %s236_s11, 4294965760  ;;  %v3405_v0 = vmov 0.0|0.0   ;;  %vm3406_vm0 = vmmov 0   ;;  %v3407_v1 = vmov 0.0   ;;  %v280_v2 = vld [vmem:[%s3662_s0] sm:$0xff]  ;;  %v281_v3 = vld [vmem:[%s3662_s0 + $0x8] sm:$0xff] }
  0x90   : > { %3023 = vmatprep.subr.bf16.mxu0 %v3405_v0  ;;  %2817 = vmatprep.mubr.msk.f32.mxu0 %vm3406_vm0, %v3407_v1  ;;  %s3676_s24 = scalar_lea.vmem [#allocation8], %s3117_s29  ;;  %v3024_v6 = vpack.c.bf16 %v281_v3, %v280_v2  ;;  %v574_v7 = vmul.f32 %v280_v2, %v280_v2  ;;  %v575_v8 = vmul.f32 %v281_v3, %v281_v3  ;;  %v3680_v9 = vld [vmem:[#allocation2] sm:$0x3f]  ;;  %vm284_vm1 = vcmask 130048   ;;  %v278_v11 = vld [vmem:[#allocation5] sm:$0xff]  ;;  %v279_v12 = vld [vmem:[#allocation5 + $0x8] sm:$0xff] }
  0x91   : > { %3026 = vmatprep.subr.bf16.mxu1 %v3405_v0  ;;  %2824 = vmatprep.mubr.msk.f32.mxu1 %vm3406_vm0, %v3407_v1  ;;  %v282_v4 = vld [vmem:[%s3676_s24] sm:$0xff]  ;;  %v283_v5 = vld [vmem:[%s3676_s24 + $0x8] sm:$0xff]  ;;  %v3688_v16 = vpack.c.bf16 %v279_v12, %v278_v11  ;;  %v2692_v21 = vld [vmem:[%s3662_s0 + $0x10] sm:$0xff]  ;;  %vm1027_vm2 = vcmask 46080   ;;  %s2720_s25 = sshll.u32 %s3455_s19, 4  ;;  %s276_s14 = scalar_lea.vmem [#allocation9], %s3659_s30 }
  0x92   : > { %3025 = vmatpush3.bf16.msra.mxu0 %v3024_v6  ;;  %v3030_v10 = vpack.c.bf16 %v283_v5, %v282_v4  ;;  %v3036_v13 = vpack.c.bf16 %v575_v8, %v574_v7  ;;  %v719_v14 = vmul.f32 %v282_v4, %v282_v4  ;;  %v720_v15 = vmul.f32 %v283_v5, %v283_v5  ;;  %v2693_v22 = vld [vmem:[%s3662_s0 + $0x18] sm:$0xff]  ;;  %v2694_v24 = vld [vmem:[%s3676_s24 + $0x10] sm:$0xff]  ;;  %v2706_v36 = vld [vmem:[%s3662_s0 + $0x20] sm:$0xff]  ;;  %s2567_s6 = sshll.u32 %s276_s14, 4  ;;  %s3844_s10 = scalar_lea.hbm %s3892_s4, %s2720_s25  ;;  %s3846_s6 = int_to_ptr.vmem [resolvable:$true] %s2567_s6 }
  0x93   : > { %3029 = vmatprep.subr.bf16.mxu0 %v3405_v0  ;;  %v864_v17 = vmul.f32 %v282_v4, %v280_v2  ;;  %v865_v18 = vmul.f32 %v283_v5, %v281_v3  ;;  %3028 = vmatpush3.bf16.msra.mxu1 %v3688_v16  ;;  %v3054_v23 = vpack.c.bf16 %v2693_v22, %v2692_v21  ;;  %v2695_v25 = vld [vmem:[%s3676_s24 + $0x18] sm:$0xff]  ;;  %v2707_v37 = vld [vmem:[%s3662_s0 + $0x28] sm:$0xff]  ;;  %v2708_v39 = vld [vmem:[%s3676_s24 + $0x20] sm:$0xff]  ;;  %vm2552_vm3 = vcmask 0   ;;  %s2555_s20 = scalar_lea.sflag [#allocation4], %s3659_s30  ;;  %s3323_s19 = scalar_lea.vmem %s3846_s6, 16 }
  0x94   : > { %v3042_v19 = vpack.c.bf16 %v720_v15, %v719_v14  ;;  %3032 = vmatprep.subr.bf16.mxu1 %v3405_v0  ;;  %v3060_v26 = vpack.c.bf16 %v2695_v25, %v2694_v24  ;;  %v1331_v27 = vmul.f32 %v2692_v21, %v2692_v21  ;;  %v1332_v28 = vmul.f32 %v2693_v22, %v2693_v22  ;;  %v2709_v40 = vld [vmem:[%s3676_s24 + $0x28] sm:$0xff]  ;;  %p3324_p10 = scmp.ne.s32.totalorder %s3846_s6, %s3323_s19  ;;  %p3921_p9 = scmp.ne.s32.totalorder %s3905_s27, 0 }
  0x95   : > { %2818 = vmatmul.mubr.msk.f32.vlgmr.msra.gmra.mrb[0].mxu0 %vm284_vm1, %v3680_v9  ;;  %v3048_v20 = vpack.c.bf16 %v865_v18, %v864_v17  ;;  %v1476_v30 = vmul.f32 %v2694_v24, %v2694_v24  ;;  %v1477_v31 = vmul.f32 %v2695_v25, %v2695_v25  ;;  %v1621_v33 = vmul.f32 %v2694_v24, %v2692_v21  ;;  %s3408_s13 = smov [#allocation9]  }
  0x96   : > { %3031 = vmatpush3.bf16.msra.mxu0 %v3030_v10  ;;  %2831 = vmatprep.mubr.msk.f32.mxu0 %vm3406_vm0, %v3407_v1  ;;  %v3066_v29 = vpack.c.bf16 %v1332_v28, %v1331_v27  ;;  %v1622_v34 = vmul.f32 %v2695_v25, %v2693_v22  ;;  %v3084_v38 = vpack.c.bf16 %v2707_v37, %v2706_v36  ;;  %p3325_p1 = pnand %p3324_p10, %p3921_p9  ;;  %s3327_s22 = sshll.u32 %s3408_s13, 4  ;;  %s3328_s22 = int_to_ptr.vmem [resolvable:$false] %s3327_s22 }
  0x97   : > { %3035 = vmatprep.subr.bf16.mxu0 %v3405_v0  ;;  %v3072_v32 = vpack.c.bf16 %v1477_v31, %v1476_v30  ;;  %v3090_v41 = vpack.c.bf16 %v2709_v40, %v2708_v39  ;;  %v2087_v42 = vmul.f32 %v2706_v36, %v2706_v36  ;;  %v2088_v43 = vmul.f32 %v2707_v37, %v2707_v37  ;;  %s3329_s7 = scalar_lea.vmem %s3328_s22, 32  ;;  %p3330_p4 = scmp.lt.s32.totalorder %s3846_s6, %s3328_s22 }
  0x98   : > { %v3078_v35 = vpack.c.bf16 %v1622_v34, %v1621_v33  ;;  %v2232_v45 = vmul.f32 %v2708_v39, %v2708_v39  ;;  %v2233_v46 = vmul.f32 %v2709_v40, %v2709_v40  ;;  %v2377_v48 = vmul.f32 %v2708_v39, %v2706_v36  ;;  %p3326_p2 = pneg %p3325_p1  ;;  %p3331_p5 = scmp.lt.s32.totalorder %s3329_s7, %s3323_s19 }
  0x99   : > { %2832 = vmatmul.mubr.msk.f32.vlgmr.msra.gmra.mrb[2].mxu0 %vm284_vm1, %v3680_v9  ;;  %v3096_v44 = vpack.c.bf16 %v2088_v43, %v2087_v42  ;;  %v2378_v49 = vmul.f32 %v2709_v40, %v2707_v37 }
  0x9a   : > { %3037 = vmatpush3.bf16.msra.mxu0 %v3036_v13  ;;  %2845 = vmatprep.mubr.msk.f32.mxu0 %vm3406_vm0, %v3407_v1  ;;  %v3102_v47 = vpack.c.bf16 %v2233_v46, %v2232_v45  ;;  %p3332_p6 = por %p3331_p5, %p3330_p4 }
  0x9b   : > { %3041 = vmatprep.subr.bf16.mxu0 %v3405_v0  ;;  %v3108_v50 = vpack.c.bf16 %v2378_v49, %v2377_v48 }
  0x9c   : > { %p3333_p13 = pnand %p3332_p6, %p3326_p2 }
  0x9d   : > { %2846 = vmatmul.mubr.msk.f32.vlgmr.msra.gmra.mrb[4].mxu0 %vm284_vm1, %v3680_v9 }
  0x9e   : > { %3043 = vmatpush3.bf16.msra.mxu0 %v3042_v19  ;;  %2859 = vmatprep.mubr.msk.f32.mxu0 %vm3406_vm0, %v3407_v1 }
  0x9f   : > { %3047 = vmatprep.subr.bf16.mxu0 %v3405_v0 }
  0xa1   : > { %2860 = vmatmul.mubr.msk.f32.vlgmr.msra.gmra.mrb[6].mxu0 %vm284_vm1, %v3680_v9 }
  0xa2   : > { %3049 = vmatpush3.bf16.msra.mxu0 %v3048_v20  ;;  %2873 = vmatprep.mubr.msk.f32.mxu0 %vm3406_vm0, %v3407_v1 }
  0xa3   : > { %3053 = vmatprep.subr.bf16.mxu0 %v3405_v0 }
  0xa5   : > { %2874 = vmatmul.mubr.msk.f32.vlgmr.msra.gmra.mrb[8].mxu0 %vm284_vm1, %v3680_v9 }
  0xa6   : > { %3055 = vmatpush3.bf16.msra.mxu0 %v3054_v23  ;;  %2887 = vmatprep.mubr.msk.f32.mxu0 %vm3406_vm0, %v3407_v1 }
  0xa7   : > { %3059 = vmatprep.subr.bf16.mxu0 %v3405_v0 }
  0xa9   : > { %2888 = vmatmul.mubr.msk.f32.vlgmr.msra.gmra.mrb[10].mxu0 %vm284_vm1, %v3680_v9 }
  0xaa   : > { %3061 = vmatpush3.bf16.msra.mxu0 %v3060_v26  ;;  %2901 = vmatprep.mubr.msk.f32.mxu0 %vm3406_vm0, %v3407_v1 }
  0xab   : > { %3065 = vmatprep.subr.bf16.mxu0 %v3405_v0 }
  0xad   : > { %2902 = vmatmul.mubr.msk.f32.vlgmr.msra.gmra.mrb[12].mxu0 %vm284_vm1, %v3680_v9 }
  0xae   : > { %3067 = vmatpush3.bf16.msra.mxu0 %v3066_v29  ;;  %2915 = vmatprep.mubr.msk.f32.mxu0 %vm3406_vm0, %v3407_v1 }
  0xaf   : > { %3071 = vmatprep.subr.bf16.mxu0 %v3405_v0 }
  0xb1   : > { %2916 = vmatmul.mubr.msk.f32.vlgmr.msra.gmra.mrb[14].mxu0 %vm284_vm1, %v3680_v9 }
  0xb2   : > { %3073 = vmatpush3.bf16.msra.mxu0 %v3072_v32  ;;  %2929 = vmatprep.mubr.msk.f32.mxu0 %vm3406_vm0, %v3407_v1 }
  0xb3   : > { %3077 = vmatprep.subr.bf16.mxu0 %v3405_v0 }
  0xb5   : > { %2930 = vmatmul.mubr.msk.f32.vlgmr.msra.gmra.mrb[16].mxu0 %vm284_vm1, %v3680_v9 }
  0xb6   : > { %3079 = vmatpush3.bf16.msra.mxu0 %v3078_v35  ;;  %2943 = vmatprep.mubr.msk.f32.mxu0 %vm3406_vm0, %v3407_v1 }
  0xb7   : > { %3083 = vmatprep.subr.bf16.mxu0 %v3405_v0 }
  0xb9   : > { %2944 = vmatmul.mubr.msk.f32.vlgmr.msra.gmra.mrb[18].mxu0 %vm284_vm1, %v3680_v9 }
  0xba   : > { %3085 = vmatpush3.bf16.msra.mxu0 %v3084_v38  ;;  %2957 = vmatprep.mubr.msk.f32.mxu0 %vm3406_vm0, %v3407_v1 }
  0xbb   : > { %3089 = vmatprep.subr.bf16.mxu0 %v3405_v0 }
  0xbd   : > { %2958 = vmatmul.mubr.msk.f32.vlgmr.msra.gmra.mrb[20].mxu0 %vm284_vm1, %v3680_v9 }
  0xbe   : > { %3091 = vmatpush3.bf16.msra.mxu0 %v3090_v41  ;;  %2971 = vmatprep.mubr.msk.f32.mxu0 %vm3406_vm0, %v3407_v1 }
  0xbf   : > { %3095 = vmatprep.subr.bf16.mxu0 %v3405_v0 }
  0xc1   : > { %2972 = vmatmul.mubr.msk.f32.vlgmr.msra.gmra.mrb[22].mxu0 %vm284_vm1, %v3680_v9 }
  0xc2   : > { %3097 = vmatpush3.bf16.msra.mxu0 %v3096_v44  ;;  %2985 = vmatprep.mubr.msk.f32.mxu0 %vm3406_vm0, %v3407_v1 }
  0xc3   : > { %3101 = vmatprep.subr.bf16.mxu0 %v3405_v0 }
  0xc5   : > { %2986 = vmatmul.mubr.msk.f32.vlgmr.msra.gmra.mrb[24].mxu0 %vm284_vm1, %v3680_v9 }
  0xc6   : > { %3103 = vmatpush3.bf16.msra.mxu0 %v3102_v47  ;;  %2999 = vmatprep.mubr.msk.f32.mxu0 %vm3406_vm0, %v3407_v1 }
  0xc7   : > { %3107 = vmatprep.subr.bf16.mxu0 %v3405_v0 }
  0xc9   : > { %3000 = vmatmul.mubr.msk.f32.vlgmr.msra.gmra.mrb[26].mxu0 %vm284_vm1, %v3680_v9 }
  0xca   : > { %3109 = vmatpush3.bf16.msra.mxu0 %v3108_v50  ;;  %3013 = vmatprep.mubr.msk.f32.mxu0 %vm3406_vm0, %v3407_v1 }
  0xcd   : > { %3014 = vmatmul.mubr.msk.f32.vlgmr.msra.gmra.mrb[28].mxu0 %vm284_vm1, %v3680_v9 }
 0x168   : > { %v354_v51 = vpop.f32.mrb[0].mxu0 }
 0x169   : > { %v2819_v52 = vpop.f32.mrb[1].mxu0  ;;  %2825 = vmatmul.mubr.msk.f32.vlgmr.msra.gmra.mrb[0].mxu1 %vm284_vm1, %v354_v51 }
 0x16a   : > { %3034 = vmatpush3.bf16.msra.mxu1 %v3688_v16  ;;  %2838 = vmatprep.mubr.msk.f32.mxu1 %vm3406_vm0, %v3407_v1 }
 0x16b   : > { %3038 = vmatprep.subr.bf16.mxu1 %v3405_v0 }
 0x16c   : > { %v497_v53 = vpop.f32.mrb[2].mxu0 }
 0x16d   : > { %v2833_v54 = vpop.f32.mrb[3].mxu0  ;;  %2839 = vmatmul.mubr.msk.f32.vlgmr.msra.gmra.mrb[2].mxu1 %vm284_vm1, %v497_v53 }
 0x16e   : > { %3040 = vmatpush3.bf16.msra.mxu1 %v3688_v16  ;;  %2852 = vmatprep.mubr.msk.f32.mxu1 %vm3406_vm0, %v3407_v1 }
 0x16f   : > { %3044 = vmatprep.subr.bf16.mxu1 %v3405_v0 }
 0x170   : > { %v642_v55 = vpop.f32.mrb[4].mxu0 }
 0x171   : > { %v2847_v56 = vpop.f32.mrb[5].mxu0  ;;  %2853 = vmatmul.mubr.msk.f32.vlgmr.msra.gmra.mrb[4].mxu1 %vm284_vm1, %v642_v55 }
 0x172   : > { %3046 = vmatpush3.bf16.msra.mxu1 %v3688_v16  ;;  %2866 = vmatprep.mubr.msk.f32.mxu1 %vm3406_vm0, %v3407_v1 }
 0x173   : > { %3050 = vmatprep.subr.bf16.mxu1 %v3405_v0 }
 0x174   : > { %v787_v57 = vpop.f32.mrb[6].mxu0 }
 0x175   : > { %v2861_v58 = vpop.f32.mrb[7].mxu0  ;;  %2867 = vmatmul.mubr.msk.f32.vlgmr.msra.gmra.mrb[6].mxu1 %vm284_vm1, %v787_v57 }
 0x176   : > { %3052 = vmatpush3.bf16.msra.mxu1 %v3688_v16  ;;  %2880 = vmatprep.mubr.msk.f32.mxu1 %vm3406_vm0, %v3407_v1 }
 0x177   : > { %3056 = vmatprep.subr.bf16.mxu1 %v3405_v0 }
 0x178   : > { %v932_v59 = vpop.f32.mrb[8].mxu0 }
 0x179   : > { %v2875_v60 = vpop.f32.mrb[9].mxu0  ;;  %2881 = vmatmul.mubr.msk.f32.vlgmr.msra.gmra.mrb[8].mxu1 %vm284_vm1, %v932_v59 }
 0x17a   : > { %3058 = vmatpush3.bf16.msra.mxu1 %v3688_v16  ;;  %2894 = vmatprep.mubr.msk.f32.mxu1 %vm3406_vm0, %v3407_v1 }
 0x17b   : > { %3062 = vmatprep.subr.bf16.mxu1 %v3405_v0 }
 0x17c   : > { %v1111_v61 = vpop.f32.mrb[10].mxu0 }
 0x17d   : > { %v2889_v62 = vpop.f32.mrb[11].mxu0  ;;  %2895 = vmatmul.mubr.msk.f32.vlgmr.msra.gmra.mrb[10].mxu1 %vm284_vm1, %v1111_v61 }
 0x17e   : > { %3064 = vmatpush3.bf16.msra.mxu1 %v3688_v16  ;;  %2908 = vmatprep.mubr.msk.f32.mxu1 %vm3406_vm0, %v3407_v1 }
 0x17f   : > { %3068 = vmatprep.subr.bf16.mxu1 %v3405_v0 }
 0x180   : > { %v1254_v63 = vpop.f32.mrb[12].mxu0 }
 0x181   : > { %v2903_v2 = vpop.f32.mrb[13].mxu0  ;;  %2909 = vmatmul.mubr.msk.f32.vlgmr.msra.gmra.mrb[12].mxu1 %vm284_vm1, %v1254_v63 }
 0x182   : > { %3070 = vmatpush3.bf16.msra.mxu1 %v3688_v16  ;;  %2922 = vmatprep.mubr.msk.f32.mxu1 %vm3406_vm0, %v3407_v1 }
 0x183   : > { %3074 = vmatprep.subr.bf16.mxu1 %v3405_v0 }
 0x184   : > { %v1399_v3 = vpop.f32.mrb[14].mxu0 }
 0x185   : > { %v2917_v4 = vpop.f32.mrb[15].mxu0  ;;  %2923 = vmatmul.mubr.msk.f32.vlgmr.msra.gmra.mrb[14].mxu1 %vm284_vm1, %v1399_v3 }
 0x186   : > { %3076 = vmatpush3.bf16.msra.mxu1 %v3688_v16  ;;  %2936 = vmatprep.mubr.msk.f32.mxu1 %vm3406_vm0, %v3407_v1 }
 0x187   : > { %3080 = vmatprep.subr.bf16.mxu1 %v3405_v0 }
 0x188   : > { %v1544_v5 = vpop.f32.mrb[16].mxu0 }
 0x189   : > { %v2931_v6 = vpop.f32.mrb[17].mxu0  ;;  %2937 = vmatmul.mubr.msk.f32.vlgmr.msra.gmra.mrb[16].mxu1 %vm284_vm1, %v1544_v5 }
 0x18a   : > { %3082 = vmatpush3.bf16.msra.mxu1 %v3688_v16  ;;  %2950 = vmatprep.mubr.msk.f32.mxu1 %vm3406_vm0, %v3407_v1 }
 0x18b   : > { %3086 = vmatprep.subr.bf16.mxu1 %v3405_v0 }
 0x18c   : > { %v1689_v7 = vpop.f32.mrb[18].mxu0 }
 0x18d   : > { %v2945_v8 = vpop.f32.mrb[19].mxu0  ;;  %2951 = vmatmul.mubr.msk.f32.vlgmr.msra.gmra.mrb[18].mxu1 %vm284_vm1, %v1689_v7 }
 0x18e   : > { %3088 = vmatpush3.bf16.msra.mxu1 %v3688_v16  ;;  %2964 = vmatprep.mubr.msk.f32.mxu1 %vm3406_vm0, %v3407_v1 }
 0x18f   : > { %3092 = vmatprep.subr.bf16.mxu1 %v3405_v0 }
 0x190   : > { %v1867_v9 = vpop.f32.mrb[20].mxu0 }
 0x191   : > { %v2959_v10 = vpop.f32.mrb[21].mxu0  ;;  %2965 = vmatmul.mubr.msk.f32.vlgmr.msra.gmra.mrb[20].mxu1 %vm284_vm1, %v1867_v9 }
 0x192   : > { %3094 = vmatpush3.bf16.msra.mxu1 %v3688_v16  ;;  %2978 = vmatprep.mubr.msk.f32.mxu1 %vm3406_vm0, %v3407_v1 }
 0x193   : > { %3098 = vmatprep.subr.bf16.mxu1 %v3405_v0 }
 0x194   : > { %v2010_v11 = vpop.f32.mrb[22].mxu0 }
 0x195   : > { %v2973_v12 = vpop.f32.mrb[23].mxu0  ;;  %2979 = vmatmul.mubr.msk.f32.vlgmr.msra.gmra.mrb[22].mxu1 %vm284_vm1, %v2010_v11 }
 0x196   : > { %3100 = vmatpush3.bf16.msra.mxu1 %v3688_v16  ;;  %2992 = vmatprep.mubr.msk.f32.mxu1 %vm3406_vm0, %v3407_v1 }
 0x197   : > { %3104 = vmatprep.subr.bf16.mxu1 %v3405_v0 }
 0x198   : > { %v2155_v13 = vpop.f32.mrb[24].mxu0 }
 0x199   : > { %v2987_v14 = vpop.f32.mrb[25].mxu0  ;;  %2993 = vmatmul.mubr.msk.f32.vlgmr.msra.gmra.mrb[24].mxu1 %vm284_vm1, %v2155_v13 }
 0x19a   : > { %3106 = vmatpush3.bf16.msra.mxu1 %v3688_v16  ;;  %3006 = vmatprep.mubr.msk.f32.mxu1 %vm3406_vm0, %v3407_v1 }
 0x19b   : > { %3110 = vmatprep.subr.bf16.mxu1 %v3405_v0 }
 0x19c   : > { %v2300_v15 = vpop.f32.mrb[26].mxu0 }
 0x19d   : > { %v3001_v17 = vpop.f32.mrb[27].mxu0  ;;  %3007 = vmatmul.mubr.msk.f32.vlgmr.msra.gmra.mrb[26].mxu1 %vm284_vm1, %v2300_v15 }
 0x19e   : > { %3112 = vmatpush3.bf16.msra.mxu1 %v3688_v16  ;;  %3020 = vmatprep.mubr.msk.f32.mxu1 %vm3406_vm0, %v3407_v1 }
 0x1a0   : > { %v2445_v18 = vpop.f32.mrb[28].mxu0 }
 0x1a1   : > { %3021 = vmatmul.mubr.msk.f32.vlgmr.msra.gmra.mrb[28].mxu1 %vm284_vm1, %v2445_v18  ;;  %v3015_v19 = vpop.f32.mrb[29].mxu0 }
 0x23c   : > { %v427_v20 = vpop.f32.mrb[0].mxu1 }
 0x23d   : > { %v2826_v21 = vpop.f32.mrb[1].mxu1  ;;  %v1009_v23 = vmul.f32 %v427_v20, %v427_v20 }
 0x240   : > { %v570_v22 = vpop.f32.mrb[2].mxu1 }
 0x241   : > { %v1010_v24 = vmul.f32 %v570_v22, %v570_v22  ;;  %v1011_v25 = vmul.f32 %v570_v22, %v427_v20  ;;  %v2840_v0 = vpop.f32.mrb[3].mxu1 }
 0x243   : > { %v1020_v26 = vadd.f32 %v1010_v24, %v1009_v23  ;;  %v1015_v33 = vmul.f32 2.0, %v1011_v25 }
 0x244   : > { %v715_v27 = vpop.f32.mrb[4].mxu1 }
 0x245   : > { %v1012_v28 = vsub.f32 %v715_v27, %v1009_v23  ;;  %v2854_v29 = vpop.f32.mrb[5].mxu1  ;;  %v1021_v34 = vadd.f32 0.0001, %v1020_v26  ;;  %v1016_v41 = vadd.f32 0.0001, %v1015_v33 }
 0x248   : > { %v860_v30 = vpop.f32.mrb[6].mxu1 }
 0x249   : > { %v1013_v16 = vsub.f32 %v860_v30, %v1010_v24  ;;  %v2868_v31 = vpop.f32.mrb[7].mxu1 }
 0x24b   : > { %v1022_v32 = vadd.f32 %v1013_v16, %v1012_v28 }
 0x24c   : > { %v1005_v1 = vpop.f32.mrb[8].mxu1 }
 0x24d   : > { %v1023_v35 = vadd.f32 0.0009, %v1022_v32  ;;  %v1014_v36 = vsub.f32 %v1005_v1, %v1011_v25  ;;  %v2882_v37 = vpop.f32.mrb[9].mxu1 }
 0x24f   : > { %v1024_v38 = vmul.f32 %v1023_v35, %v1021_v34  ;;  %v1017_v39 = vmul.f32 2.0, %v1014_v36 }
 0x250   : > { %v1184_v40 = vpop.f32.mrb[10].mxu1 }
 0x251   : > { %3201 = vrcp.f32 %v1024_v38  ;;  %v1018_v42 = vadd.f32 0.0009, %v1017_v39  ;;  %v2896_v43 = vpop.f32.mrb[11].mxu1  ;;  %v1766_v46 = vmul.f32 %v1184_v40, %v1184_v40 }
 0x253   : > { %v1019_v44 = vmul.f32 %v1018_v42, %v1016_v41 }
 0x254   : > { %v1327_v45 = vpop.f32.mrb[12].mxu1 }
 0x255   : > { %v1767_v47 = vmul.f32 %v1327_v45, %v1327_v45  ;;  %v1768_v48 = vmul.f32 %v1327_v45, %v1184_v40  ;;  %v2910_v49 = vpop.f32.mrb[13].mxu1 }
 0x257   : > { %v1777_v50 = vadd.f32 %v1767_v47, %v1766_v46  ;;  %v1772_v62 = vmul.f32 2.0, %v1768_v48 }
 0x258   : > { %v1472_v51 = vpop.f32.mrb[14].mxu1 }
 0x259   : > { %v1769_v52 = vsub.f32 %v1472_v51, %v1766_v46  ;;  %v2924_v53 = vpop.f32.mrb[15].mxu1  ;;  %v1778_v63 = vadd.f32 0.0001, %v1777_v50  ;;  %v1773_v8 = vadd.f32 0.0001, %v1772_v62 }
 0x25b   : > { %v3202_v54 = vpop.eup %3201 }
 0x25c   : > { %v1617_v55 = vpop.f32.mrb[16].mxu1  ;;  %v1026_v56 = vmul.f32 %v3202_v54, %v1019_v44 }
 0x25d   : > { %v1770_v57 = vsub.f32 %v1617_v55, %v1767_v47  ;;  %v2938_v58 = vpop.f32.mrb[17].mxu1 }
 0x25e   : > { %v1028_v59 = vsel %vm1027_vm2, %v1026_v56, 0.0 }
 0x25f   : > { %v1779_v60 = vadd.f32 %v1770_v57, %v1769_v52  ;;  %1029 = vadd.xlane.f32.xlu0 %v1028_v59 }
 0x260   : > { %v1762_v61 = vpop.f32.mrb[18].mxu1 }
 0x261   : > { %v1780_v2 = vadd.f32 0.0009, %v1779_v60  ;;  %v1771_v3 = vsub.f32 %v1762_v61, %v1768_v48  ;;  %v2952_v4 = vpop.f32.mrb[19].mxu1 }
 0x263   : > { %v1781_v5 = vmul.f32 %v1780_v2, %v1778_v63  ;;  %v1774_v6 = vmul.f32 2.0, %v1771_v3 }
 0x264   : > { %v1940_v7 = vpop.f32.mrb[20].mxu1 }
 0x265   : > { %3203 = vrcp.f32 %v1781_v5  ;;  %v1775_v9 = vadd.f32 0.0009, %v1774_v6  ;;  %v2966_v10 = vpop.f32.mrb[21].mxu1  ;;  %v2522_v13 = vmul.f32 %v1940_v7, %v1940_v7 }
 0x267   : > { %v1776_v11 = vmul.f32 %v1775_v9, %v1773_v8 }
 0x268   : > { %v2083_v12 = vpop.f32.mrb[22].mxu1 }
 0x269   : > { %v2523_v14 = vmul.f32 %v2083_v12, %v2083_v12  ;;  %v2524_v15 = vmul.f32 %v2083_v12, %v1940_v7  ;;  %v2980_v17 = vpop.f32.mrb[23].mxu1 }
 0x26b   : > { %v2533_v18 = vadd.f32 %v2523_v14, %v2522_v13  ;;  %v2528_v29 = vmul.f32 2.0, %v2524_v15 }
 0x26c   : > { %v2228_v19 = vpop.f32.mrb[24].mxu1 }
 0x26d   : > { %v2525_v20 = vsub.f32 %v2228_v19, %v2522_v13  ;;  %v2994_v21 = vpop.f32.mrb[25].mxu1  ;;  %v2534_v30 = vadd.f32 0.0001, %v2533_v18  ;;  %v2529_v34 = vadd.f32 0.0001, %v2528_v29 }
 0x26f   : > { %v3204_v22 = vpop.eup %3203 }
 0x270   : > { %v2373_v23 = vpop.f32.mrb[26].mxu1  ;;  %v1783_v24 = vmul.f32 %v3204_v22, %v1776_v11 }
 0x271   : > { %v2526_v25 = vsub.f32 %v2373_v23, %v2523_v14  ;;  %v3008_v0 = vpop.f32.mrb[27].mxu1 }
 0x272   : > { %v1784_v26 = vsel %vm1027_vm2, %v1783_v24, 0.0 }
 0x273   : > { %v2535_v27 = vadd.f32 %v2526_v25, %v2525_v20  ;;  %1785 = vadd.xlane.f32.xlu0 %v1784_v26 }
 0x274   : > { %v2518_v28 = vpop.f32.mrb[28].mxu1 }
 0x275   : > { %v2536_v16 = vadd.f32 0.0009, %v2535_v27  ;;  %v2527_v31 = vsub.f32 %v2518_v28, %v2524_v15  ;;  %v3022_v32 = vpop.f32.mrb[29].mxu1 }
 0x277   : > { %v2537_v1 = vmul.f32 %v2536_v16, %v2534_v30  ;;  %v2530_v33 = vmul.f32 2.0, %v2527_v31 }
 0x279   : > { %3205 = vrcp.f32 %v2537_v1  ;;  %v2531_v35 = vadd.f32 0.0009, %v2530_v33 }
 0x27b   : > { %v2532_v36 = vmul.f32 %v2531_v35, %v2529_v34 }
 0x283   : > { %v3206_v37 = vpop.eup %3205 }
 0x284   : > { %v2539_v38 = vmul.f32 %v3206_v37, %v2532_v36 }
 0x286   : > { %v2540_v39 = vsel %vm1027_vm2, %v2539_v38, 0.0 }
 0x287   : > { %2541 = vadd.xlane.f32.xlu1 %v2540_v39 }
 0x2ec   : > { %v1030_v40 = vpop.xlane.xlu0 %1029 }
 0x2ed   : > { %v1031_v41 = vrot.slane %v1030_v40, 4 }
 0x2ef   : > { %v1032_v42 = vadd.f32 %v1031_v41, %v1030_v40 }
 0x2f1   : > { %v1033_v43 = vrot.slane %v1032_v42, 2 }
 0x2f3   : > { %v1034_v44 = vadd.f32 %v1033_v43, %v1032_v42 }
 0x2f5   : > { %v1035_v45 = vrot.slane %v1034_v44, 1 }
 0x2f7   : > { %v1036_v46 = vadd.f32 %v1035_v45, %v1034_v44 }
 0x2f9   : > { %3118 = vpush %v1036_v46 }
 0x300   : > { %v1786_v47 = vpop.xlane.xlu0 %1785 }
 0x301   : > { %v1787_v48 = vrot.slane %v1786_v47, 4 }
 0x303   : > { %v1788_v49 = vadd.f32 %v1787_v48, %v1786_v47 }
 0x305   : > { %v1789_v50 = vrot.slane %v1788_v49, 2 }
 0x307   : > { %v1790_v51 = vadd.f32 %v1789_v50, %v1788_v49 }
 0x309   : > { %v1791_v52 = vrot.slane %v1790_v51, 1 }
 0x30b   : > { %v1792_v53 = vadd.f32 %v1791_v52, %v1790_v51 }
 0x30d   : > { %3120 = vpush %v1792_v53 }
 0x314   : > { %v2542_v54 = vpop.xlane.xlu1 %2541 }
 0x315   : > { %v2543_v55 = vrot.slane %v2542_v54, 4 }
 0x317   : > { %v2544_v56 = vadd.f32 %v2543_v55, %v2542_v54 }
 0x319   : > { %v2545_v57 = vrot.slane %v2544_v56, 2 }
 0x31b   : > { %v2546_v58 = vadd.f32 %v2545_v57, %v2544_v56 }
 0x31d   : > { %v2547_v59 = vrot.slane %v2546_v58, 1 }
 0x31f   : > { %v2548_v60 = vadd.f32 %v2547_v59, %v2546_v58 }
 0x321   : > { %3122 = vpush %v2548_v60 }
 0x32a   : > { %s3119_s26 = spop %3118 }
 0x33e   : > { %s3121_s17 = spop %3120 }
 0x33f   : > { %s1794_s12 = sadd.f32 %s3121_s17, %s3119_s26 }
 0x352   : > { %s3123_s5 = spop %3122 }
 0x353   : > { %s2550_s8 = sadd.f32 %s3123_s5, %s1794_s12 }
 0x355   : > { %v2551_v61 = vstv %s2550_s8 }
 0x356   : > { %2553 = vst.msk [vmem:[%s276_s14] sm:$0x1] %vm2552_vm3, %v2551_v61 }
 0x357   : > { %3336 = shalt.err (!%p3333_p13)
}
 0x358   : > { %s3337_s30 = scalar_lea.hbm %s3844_s10, 16  ;;  %s3341_s0 = scalar_lea.hbm %s3892_s4, 32 }
 0x359   : > { %p3338_p12 = scmp.ne.s32.totalorder %s3844_s10, %s3337_s30  ;;  %p3342_p3 = scmp.lt.u32.totalorder %s3844_s10, %s3892_s4 }
 0x35a   : > { %p3343_p8 = scmp.lt.u32.totalorder %s3341_s0, %s3337_s30  ;;  %p3345_p10 = scmp.lt.u32.totalorder %s3337_s30, %s3844_s10 }
 0x35b   : > { %p3339_p0 = pnand %p3338_p12, %p3921_p9 }
 0x35c   : > { %p3344_p11 = por %p3343_p8, %p3342_p3 }
 0x35d   : > { %p3340_p7 = pneg %p3339_p0 }
 0x35e   : > { %p3346_p1 = por %p3345_p10, %p3344_p11 }
 0x360   : > { %p3347_p2 = pnand %p3346_p1, %p3340_p7 }
 0x362   : > { %3350 = shalt.err (!%p3347_p2)
}
 0x363   : > { %3136 = dma.vmem_to_hbm [thread:$0]  (%p3921_p9), %s3846_s6, 16, %s3844_s10, %s2555_s20  }
 0x364 PF: > { %s2579_s17 = sand.u32 1, %s3385_s15   ;;  %p3922_p4 = scmp.ne.s32.totalorder %s3906_s28, 0 }
 0x365   : > { %p3923_p5 = scmp.ge.s32.totalorder %s3397_s18, 2  ;;  %s2580_s25 = scalar_lea.sflag [#allocation4], %s2579_s17 }
 0x367   : > { %p3153_p6 = pnand %p3923_p5, %p3922_p4 }
 0x369   : > { %3380 = dma.done.wait (!%p3153_p6), %s2580_s25, 16  }
 0x36a   : > { %3382 = vsyncadd (!%p3153_p6), %s2580_s25, 4294967280  ;;  %s3924_s12 = sld [smem:[#allocation14_spill]]  ;;  %s3925_s17 = sld [smem:[#allocation15_spill]] }
 0x36b   : > { %p16_p13 = scmp.ge.s32.totalorder %s3459_s21, 4   ;;  %s3926_s15 = smov %s3389_s16 }
 0x36c   : > { %s3928_s18 = smov %s3459_s21 }
 0x36d   :  { %18 = sbr.rel (!%p16_p13) target bundleno = 7 (0x7), region = 103 }
 0x370   : > { %s3927_s16 = smov %s3924_s12 }
 0x374   :  { %2584 = vsyncpa [#allocation3], 1 }
 0x375   :  { %2586 = vsyncpa [#allocation3 + $0x1], 1 }
 0x376   :  { %2587 = vsyncpa [#allocation6], 1 }
 0x377   :  { %2588 = vsyncpa [#allocation4], 1 }
 0x378   :  { %2590 = vsyncpa [#allocation4 + $0x1], 1 }

</bundles_post_ra>
